<compile_context>
chip_gen: v7x
topology: tpu7x:2x2x1
jax: 0.10.0
libtpu: 0.0.40
codegen_flags: <defaults>
</compile_context>

<pallas_src>
import functools

import jax
import jax.numpy as jnp
from jax.experimental import pallas as pl
from jax.experimental.pallas import tpu as pltpu

LN_EPS = 1e-5  # PyTorch nn.LayerNorm default


# ---------------------------------------------------------------------------
# Kernels
# ---------------------------------------------------------------------------

def _layernorm_rows(y, gamma, beta):
    """LayerNorm over the last (lane) dim, f32 math, one-pass statistics."""
    mu = jnp.mean(y, axis=-1, keepdims=True)
    m2 = jnp.mean(y * y, axis=-1, keepdims=True)
    var = jnp.maximum(m2 - mu * mu, 0.0)
    return (y - mu) * jax.lax.rsqrt(var + LN_EPS) * gamma + beta


def _ffn_kernel(x_ref, w1_ref, b1_ref, w2_ref, b2_ref, g_ref, be_ref, o_ref):
    """Fully-resident-weights path: one grid step == one row tile."""
    x = x_ref[...]
    h = jnp.dot(x, w1_ref[...], preferred_element_type=jnp.float32)
    h = jnp.maximum(h + b1_ref[...].astype(jnp.float32), 0.0)
    y = jnp.dot(h.astype(w2_ref.dtype), w2_ref[...],
                preferred_element_type=jnp.float32)
    y = y + b2_ref[...].astype(jnp.float32) + x.astype(jnp.float32)
    # TODO(synk): nn.Dropout(p=0.1) is identity at inference; training-mode
    # stochastic dropout (pltpu.prng_random_bits) is intentionally not emitted.
    o_ref[...] = _layernorm_rows(
        y, g_ref[...].astype(jnp.float32), be_ref[...].astype(jnp.float32)
    ).astype(o_ref.dtype)


def _ffn_kernel_ktiled(x_ref, w1_ref, b1_ref, w2_ref, b2_ref, g_ref, be_ref,
                       o_ref, acc_ref):
    """d_in-tiled path: grid = (row_tiles, k_tiles) with an f32 accumulator."""
    k = pl.program_id(1)
    x = x_ref[...]
    h = jnp.dot(x, w1_ref[...], preferred_element_type=jnp.float32)
    h = jnp.maximum(h + b1_ref[...].astype(jnp.float32), 0.0)
    part = jnp.dot(h.astype(w2_ref.dtype), w2_ref[...],
                   preferred_element_type=jnp.float32)

    @pl.when(k == 0)
    def _():
        acc_ref[...] = part

    @pl.when(k > 0)
    def _():
        acc_ref[...] += part

    @pl.when(k == pl.num_programs(1) - 1)
    def _():
        y = acc_ref[...] + b2_ref[...].astype(jnp.float32) + x.astype(jnp.float32)
        o_ref[...] = _layernorm_rows(
            y, g_ref[...].astype(jnp.float32), be_ref[...].astype(jnp.float32)
        ).astype(o_ref.dtype)


# ---------------------------------------------------------------------------
# Wrapper / tiling heuristics
# ---------------------------------------------------------------------------

def _round_up(n, m):
    return ((n + m - 1) // m) * m


def _sublane_multiple(dtype):
    itemsize = jnp.dtype(dtype).itemsize
    if itemsize >= 4:
        return 8
    if itemsize == 2:
        return 16
    return 32


def _vmem_capacity_bytes():
    """Per-generation VMEM capacity; conservative fallback = v7x (64 MiB)."""
    try:
        cap = int(pltpu.get_tpu_info().vmem_capacity_bytes)
        if cap > 0:
            return cap
    except Exception:
        pass
    return 64 * 1024 * 1024


def _choose_k_tile(d_h, d_in, w_itemsize, budget):
    """Largest hidden-dim (d_in) tile whose W1/W2 blocks fit the weight budget."""
    if 2 * d_h * d_in * w_itemsize <= 0.4 * budget:   # resident, single-buffered
        return d_in
    best = None
    for tk in range(128, d_in, 128):                  # tk must divide d_in exactly
        if d_in % tk:
            continue
        if 2 * 2 * d_h * tk * w_itemsize <= 0.4 * budget:   # double-buffered
            best = tk
    return best if best is not None else d_in


@functools.partial(jax.jit, static_argnames=("row_tile", "k_tile"))
def positionwise_feed_forward(x, w1, b1, w2, b2, gamma, beta, *,
                              row_tile=None, k_tile=None):
    """x: (..., d_h). Returns same shape/dtype as x."""
    orig_shape = x.shape
    d_h = orig_shape[-1]
    d_in = w1.shape[1]

    x2 = x.reshape(-1, d_h)
    n_rows = x2.shape[0]

    x_i = jnp.dtype(x.dtype).itemsize
    w_i = jnp.dtype(w1.dtype).itemsize
    sub = _sublane_multiple(x.dtype)

    cap = _vmem_capacity_bytes()
    budget = int(cap * 0.8)

    # ---- hidden-dim (d_in) tiling: only when the weights don't fit ----------
    if (k_tile is not None and d_in % int(k_tile) == 0
            and (int(k_tile) == d_in or int(k_tile) % 128 == 0)):
        tk = int(k_tile)
    else:
        tk = _choose_k_tile(d_h, d_in, w_i, budget)
    nk = d_in // tk
    k_tiled = nk > 1
    w_bufs = 2 if k_tiled else 1      # constant blocks are single-buffered

    # ---- row tile: as large as the remaining VMEM budget allows -------------
    weight_bytes = (w_bufs * (2 * d_h * tk * w_i + tk * 4)   # W1/W2 blocks + b1
                    + 3 * d_h * 4                            # b2 / gamma / beta
                    + (2 << 20))                             # fixed slack
    per_row = (2 * d_h * 2 * x_i     # x + out tiles, double-buffered
               + tk * 4              # f32 hidden-activation chunk
               + 4 * d_h * 4)        # f32 y / normed / accumulator temporaries
    if row_tile is None:
        tile = max(budget - weight_bytes, per_row * sub) // per_row
        tile = min(tile, 4096)       # diminishing returns past a few MiB/step
        # Keep >= ~4 grid steps so both v7x TensorCores stay busy, but never
        # shrink below 512 rows (no-op on single-TC v5e/v6e and tiny inputs).
        tile = min(tile, max(_round_up(pl.cdiv(n_rows, 4), sub), 512))
    else:
        tile = int(row_tile)
    tile = max(sub, (tile // sub) * sub)
    tile = min(tile, _round_up(n_rows, sub))

    grid_rows = pl.cdiv(n_rows, tile)   # partial last block is masked by Pallas

    b1_2 = b1.reshape(1, d_in)
    b2_2 = b2.reshape(1, d_h)
    g2 = gamma.reshape(1, d_h)
    be2 = beta.reshape(1, d_h)

    resident = pl.Buffered(1)           # constant index_map -> single buffer

    if not k_tiled:
        grid = (grid_rows,)
        dim_sem = ("parallel",)
        kernel = _ffn_kernel
        scratch = []
        row_spec = pl.BlockSpec((tile, d_h), lambda i: (i, 0))
        in_specs = [
            row_spec,
            pl.BlockSpec((d_h, d_in), lambda i: (0, 0), pipeline_mode=resident),
            pl.BlockSpec((1, d_in), lambda i: (0, 0), pipeline_mode=resident),
            pl.BlockSpec((d_in, d_h), lambda i: (0, 0), pipeline_mode=resident),
            pl.BlockSpec((1, d_h), lambda i: (0, 0), pipeline_mode=resident),
            pl.BlockSpec((1, d_h), lambda i: (0, 0), pipeline_mode=resident),
            pl.BlockSpec((1, d_h), lambda i: (0, 0), pipeline_mode=resident),
        ]
        out_spec = row_spec
    else:
        grid = (grid_rows, nk)
        dim_sem = ("parallel", "arbitrary")
        kernel = _ffn_kernel_ktiled
        scratch = [pltpu.VMEM((tile, d_h), jnp.float32)]
        row_spec = pl.BlockSpec((tile, d_h), lambda i, k: (i, 0))
        in_specs = [
            row_spec,
            pl.BlockSpec((d_h, tk), lambda i, k: (0, k)),
            pl.BlockSpec((1, tk), lambda i, k: (0, k)),
            pl.BlockSpec((tk, d_h), lambda i, k: (k, 0)),
            pl.BlockSpec((1, d_h), lambda i, k: (0, 0), pipeline_mode=resident),
            pl.BlockSpec((1, d_h), lambda i, k: (0, 0), pipeline_mode=resident),
            pl.BlockSpec((1, d_h), lambda i, k: (0, 0), pipeline_mode=resident),
        ]
        out_spec = row_spec

    vmem_limit = int(min(cap * 0.9, cap - (2 << 20)))

    out = pl.pallas_call(
        kernel,
        out_shape=jax.ShapeDtypeStruct((n_rows, d_h), x.dtype),
        grid_spec=pltpu.PrefetchScalarGridSpec(
            num_scalar_prefetch=0,
            grid=grid,
            in_specs=in_specs,
            out_specs=out_spec,
            scratch_shapes=scratch,
        ),
        compiler_params=pltpu.CompilerParams(
            dimension_semantics=dim_sem,
            vmem_limit_bytes=vmem_limit,
        ),
    )(x2, w1, b1_2, w2, b2_2, g2, be2)

    return out.reshape(orig_shape)


def _reference(x, w1, b1, w2, b2, gamma, beta):
    h = jnp.maximum(x @ w1 + b1, 0.0)
    y = h @ w2 + b2 + x
    mu = jnp.mean(y, axis=-1, keepdims=True)
    var = jnp.mean((y - mu) ** 2, axis=-1, keepdims=True)
    return (y - mu) * jax.lax.rsqrt(var + LN_EPS) * gamma + beta


if __name__ == "__main__":
    # Small shapes consistent with the module: batch=2, seq=8, d_h=128, d_in_h=256.
    B, S, d_h, d_in_h = 2, 8, 128, 256
    key = jax.random.PRNGKey(0)
    k_x, k_w1, k_w2, k_b1, k_b2 = jax.random.split(key, 5)

    x = jax.random.normal(k_x, (B, S, d_h), dtype=jnp.float32)

    # Conv1d(k=1) weights, stored pre-transposed/squeezed: W = conv.weight.squeeze(-1).T
    bound1 = 1.0 / (d_h ** 0.5)
    bound2 = 1.0 / (d_in_h ** 0.5)
    w1 = jax.random.uniform(k_w1, (d_h, d_in_h), jnp.float32, -bound1, bound1)
    b1 = jax.random.uniform(k_b1, (d_in_h,), jnp.float32, -bound1, bound1)
    w2 = jax.random.uniform(k_w2, (d_in_h, d_h), jnp.float32, -bound2, bound2)
    b2 = jax.random.uniform(k_b2, (d_h,), jnp.float32, -bound2, bound2)
    gamma = jnp.ones((d_h,), dtype=jnp.float32)   # LayerNorm weight
    beta = jnp.zeros((d_h,), dtype=jnp.float32)   # LayerNorm bias

    ref = _reference(x, w1, b1, w2, b2, gamma, beta)

    # 1) Default path: weights resident (single-buffered), row-parallel grid.
    out = jax.block_until_ready(
        positionwise_feed_forward(x, w1, b1, w2, b2, gamma, beta))
    assert out.shape == (B, S, d_h)
    assert jnp.allclose(out, ref, atol=1e-4, rtol=1e-4), "mismatch (resident path)"

    # 2) Force the d_in-tiled accumulator fallback (nk=2) on the same inputs.
    out_kt = jax.block_until_ready(
        positionwise_feed_forward(x, w1, b1, w2, b2, gamma, beta, k_tile=128))
    assert jnp.allclose(out_kt, ref, atol=1e-4, rtol=1e-4), "mismatch (k-tiled path)"

    # 3) Ragged row count -> exercises the masked partial last block (no pad).
    x_odd = x[:1, :5]
    ref_odd = _reference(x_odd, w1, b1, w2, b2, gamma, beta)
    out_odd = jax.block_until_ready(
        positionwise_feed_forward(x_odd, w1, b1, w2, b2, gamma, beta))
    assert jnp.allclose(out_odd, ref_odd, atol=1e-4, rtol=1e-4), "mismatch (ragged rows)"

    print("KERNEL_OK")
</pallas_src>

<mosaic_0001>
module attributes {stable_mosaic.version = 11 : i64} {
  func.func @_ffn_kernel(%arg0: i32, %arg1: memref<16x128xf32, #tpu.memory_space<vmem>>, %arg2: memref<128x256xf32, #tpu.memory_space<vmem>>, %arg3: memref<1x256xf32, #tpu.memory_space<vmem>>, %arg4: memref<256x128xf32, #tpu.memory_space<vmem>>, %arg5: memref<1x128xf32, #tpu.memory_space<vmem>>, %arg6: memref<1x128xf32, #tpu.memory_space<vmem>>, %arg7: memref<1x128xf32, #tpu.memory_space<vmem>>, %arg8: memref<16x128xf32, #tpu.memory_space<vmem>>) attributes {dimension_semantics = [#tpu.dimension_semantics<parallel>], iteration_bounds = array<i64: 1>, scalar_prefetch = 0 : i64, scratch_operands = 0 : i64, tpu.core_type = #tpu.core_type<tc>, window_params = [{transform_indices = @transform_0, window_bounds = array<i64: 16, 128>}, {pipeline_mode = #tpu.pipeline_mode<synchronous>, transform_indices = @transform_1, window_bounds = array<i64: 128, 256>}, {pipeline_mode = #tpu.pipeline_mode<synchronous>, transform_indices = @transform_2, window_bounds = array<i64: 1, 256>}, {pipeline_mode = #tpu.pipeline_mode<synchronous>, transform_indices = @transform_3, window_bounds = array<i64: 256, 128>}, {pipeline_mode = #tpu.pipeline_mode<synchronous>, transform_indices = @transform_4, window_bounds = array<i64: 1, 128>}, {pipeline_mode = #tpu.pipeline_mode<synchronous>, transform_indices = @transform_5, window_bounds = array<i64: 1, 128>}, {pipeline_mode = #tpu.pipeline_mode<synchronous>, transform_indices = @transform_6, window_bounds = array<i64: 1, 128>}, {transform_indices = @transform_7, window_bounds = array<i64: 16, 128>}]} {
    %c0 = arith.constant 0 : index
    %c0_0 = arith.constant 0 : index
    %0 = vector.load %arg1[%c0, %c0_0] : memref<16x128xf32, #tpu.memory_space<vmem>>, vector<16x128xf32>
    %c0_1 = arith.constant 0 : index
    %c0_2 = arith.constant 0 : index
    %1 = vector.load %arg2[%c0_1, %c0_2] : memref<128x256xf32, #tpu.memory_space<vmem>>, vector<128x256xf32>
    %cst = arith.constant dense<0.000000e+00> : vector<16x256xf32>
    %2 = tpu.matmul %0, %1, %cst {dimension_numbers = #tpu.dot_dimension_numbers<[1], [0], [0], [1], [0, 0, 1, 1], [], []>} : vector<16x128xf32>, vector<128x256xf32>, vector<16x256xf32> -> vector<16x256xf32>
    %c0_3 = arith.constant 0 : index
    %c0_4 = arith.constant 0 : index
    %3 = vector.load %arg3[%c0_3, %c0_4] : memref<1x256xf32, #tpu.memory_space<vmem>>, vector<1x256xf32>
    %4 = vector.broadcast %3 : vector<1x256xf32> to vector<16x256xf32>
    %5 = arith.addf %2, %4 : vector<16x256xf32>
    %cst_5 = arith.constant 0.000000e+00 : f32
    %6 = vector.broadcast %cst_5 : f32 to vector<16x256xf32>
    %7 = arith.maximumf %5, %6 : vector<16x256xf32>
    %c0_6 = arith.constant 0 : index
    %c0_7 = arith.constant 0 : index
    %8 = vector.load %arg4[%c0_6, %c0_7] : memref<256x128xf32, #tpu.memory_space<vmem>>, vector<256x128xf32>
    %cst_8 = arith.constant dense<0.000000e+00> : vector<16x128xf32>
    %9 = tpu.matmul %7, %8, %cst_8 {dimension_numbers = #tpu.dot_dimension_numbers<[1], [0], [0], [1], [0, 0, 1, 1], [], []>} : vector<16x256xf32>, vector<256x128xf32>, vector<16x128xf32> -> vector<16x128xf32>
    %c0_9 = arith.constant 0 : index
    %c0_10 = arith.constant 0 : index
    %10 = vector.load %arg5[%c0_9, %c0_10] : memref<1x128xf32, #tpu.memory_space<vmem>>, vector<1x128xf32>
    %11 = vector.broadcast %10 : vector<1x128xf32> to vector<16x128xf32>
    %12 = arith.addf %9, %11 : vector<16x128xf32>
    %13 = arith.addf %12, %0 : vector<16x128xf32>
    %c0_11 = arith.constant 0 : index
    %c0_12 = arith.constant 0 : index
    %14 = vector.load %arg6[%c0_11, %c0_12] : memref<1x128xf32, #tpu.memory_space<vmem>>, vector<1x128xf32>
    %c0_13 = arith.constant 0 : index
    %c0_14 = arith.constant 0 : index
    %15 = vector.load %arg7[%c0_13, %c0_14] : memref<1x128xf32, #tpu.memory_space<vmem>>, vector<1x128xf32>
    %cst_15 = arith.constant dense<0.000000e+00> : vector<16xf32>
    %16 = vector.multi_reduction <add>, %13, %cst_15 [1] : vector<16x128xf32> to vector<16xf32>
    %17 = vector.shape_cast %16 : vector<16xf32> to vector<16x1xf32>
    %cst_16 = arith.constant 1.280000e+02 : f32
    %18 = vector.broadcast %cst_16 : f32 to vector<16x1xf32>
    %19 = arith.divf %17, %18 : vector<16x1xf32>
    %20 = arith.mulf %13, %13 : vector<16x128xf32>
    %cst_17 = arith.constant dense<0.000000e+00> : vector<16xf32>
    %21 = vector.multi_reduction <add>, %20, %cst_17 [1] : vector<16x128xf32> to vector<16xf32>
    %22 = vector.shape_cast %21 : vector<16xf32> to vector<16x1xf32>
    %cst_18 = arith.constant 1.280000e+02 : f32
    %23 = vector.broadcast %cst_18 : f32 to vector<16x1xf32>
    %24 = arith.divf %22, %23 : vector<16x1xf32>
    %25 = arith.mulf %19, %19 : vector<16x1xf32>
    %26 = arith.subf %24, %25 : vector<16x1xf32>
    %cst_19 = arith.constant 0.000000e+00 : f32
    %27 = vector.broadcast %cst_19 : f32 to vector<16x1xf32>
    %28 = arith.maximumf %26, %27 : vector<16x1xf32>
    %29 = vector.broadcast %19 : vector<16x1xf32> to vector<16x128xf32>
    %30 = arith.subf %13, %29 : vector<16x128xf32>
    %cst_20 = arith.constant 9.99999974E-6 : f32
    %31 = vector.broadcast %cst_20 : f32 to vector<16x1xf32>
    %32 = arith.addf %28, %31 : vector<16x1xf32>
    %33 = math.rsqrt %32 : vector<16x1xf32>
    %34 = vector.broadcast %33 : vector<16x1xf32> to vector<16x128xf32>
    %35 = arith.mulf %30, %34 : vector<16x128xf32>
    %36 = vector.broadcast %14 : vector<1x128xf32> to vector<16x128xf32>
    %37 = arith.mulf %35, %36 : vector<16x128xf32>
    %38 = vector.broadcast %15 : vector<1x128xf32> to vector<16x128xf32>
    %39 = arith.addf %37, %38 : vector<16x128xf32>
    %c0_21 = arith.constant 0 : index
    %c0_22 = arith.constant 0 : index
    %40 = vector.load %arg8[%c0_21, %c0_22] : memref<16x128xf32, #tpu.memory_space<vmem>>, vector<16x128xf32>
    tpu.vector_store %arg8[%c0_21, %c0_22], %39 {strides = array<i32>} : memref<16x128xf32, #tpu.memory_space<vmem>>, vector<16x128xf32>,
    return
  }
  func.func @transform_0(%arg0: i32) -> (i32, i32) {
    %c0_i32 = arith.constant 0 : i32
    %c0_i32_0 = arith.constant 0 : i32
    return %arg0, %c0_i32 : i32, i32
  }
  func.func @transform_1(%arg0: i32) -> (i32, i32) {
    %c0_i32 = arith.constant 0 : i32
    %c0_i32_0 = arith.constant 0 : i32
    %c0_i32_1 = arith.constant 0 : i32
    return %c0_i32, %c0_i32_0 : i32, i32
  }
  func.func @transform_2(%arg0: i32) -> (i32, i32) {
    %c0_i32 = arith.constant 0 : i32
    %c0_i32_0 = arith.constant 0 : i32
    %c0_i32_1 = arith.constant 0 : i32
    return %c0_i32, %c0_i32_0 : i32, i32
  }
  func.func @transform_3(%arg0: i32) -> (i32, i32) {
    %c0_i32 = arith.constant 0 : i32
    %c0_i32_0 = arith.constant 0 : i32
    %c0_i32_1 = arith.constant 0 : i32
    return %c0_i32, %c0_i32_0 : i32, i32
  }
  func.func @transform_4(%arg0: i32) -> (i32, i32) {
    %c0_i32 = arith.constant 0 : i32
    %c0_i32_0 = arith.constant 0 : i32
    %c0_i32_1 = arith.constant 0 : i32
    return %c0_i32, %c0_i32_0 : i32, i32
  }
  func.func @transform_5(%arg0: i32) -> (i32, i32) {
    %c0_i32 = arith.constant 0 : i32
    %c0_i32_0 = arith.constant 0 : i32
    %c0_i32_1 = arith.constant 0 : i32
    return %c0_i32, %c0_i32_0 : i32, i32
  }
  func.func @transform_6(%arg0: i32) -> (i32, i32) {
    %c0_i32 = arith.constant 0 : i32
    %c0_i32_0 = arith.constant 0 : i32
    %c0_i32_1 = arith.constant 0 : i32
    return %c0_i32, %c0_i32_0 : i32, i32
  }
  func.func @transform_7(%arg0: i32) -> (i32, i32) {
    %c0_i32 = arith.constant 0 : i32
    %c0_i32_0 = arith.constant 0 : i32
    return %arg0, %c0_i32 : i32, i32
  }
}

</mosaic_0001>

<bundles_post_ra>
// kernel: positionwise_feed_forward.1
= control target key start
LH: loop header
LB: loop body
LE: loop exit
PB: predicated region body
PF: predicated region fallthrough
CT: control target
= control target key end

     0   :  { %12 = vsyncpa [#allocation3], 0  ;;  %s664_s0 = inlined_call_operand.vmem [shape: f32[16,128], index: 0, kind: input, shape index: {}]   ;;  %s665_s1 = inlined_call_operand.hbm [shape: f32[128,256], index: 1, kind: input, shape index: {}]   ;;  %s666_s2 = inlined_call_operand.vmem [shape: f32[1,256], index: 2, kind: input, shape index: {}]   ;;  %s667_s3 = inlined_call_operand.hbm [shape: f32[256,128], index: 3, kind: input, shape index: {}]   ;;  %s668_s4 = inlined_call_operand.vmem [shape: f32[1,128], index: 4, kind: input, shape index: {}]   ;;  %s669_s5 = inlined_call_operand.vmem [shape: f32[1,128], index: 5, kind: input, shape index: {}]   ;;  %s670_s6 = inlined_call_operand.vmem [shape: f32[1,128], index: 6, kind: input, shape index: {}]   ;;  %s671_s7 = inlined_call_operand.hbm [shape: f32[16,128], index: 7, kind: output, shape index: {}]  }
   0x1   :  { %13 = vsyncpa [#allocation6], 0 }
   0x2   :  { %14 = vsyncpa [#allocation4], 0  ;;  %s554_s24 = smov [#allocation2]   ;;  %s482_s28 = scalar_lea.hbm %s665_s1, 4096 }
   0x3   :  { %s22_s25 = sshll.u32 %s554_s24, 4  ;;  %p483_p0 = scmp.ne.s32.totalorder %s665_s1, %s482_s28  ;;  %s23_s25 = int_to_ptr.vmem [resolvable:$true] %s22_s25 }
   0x4   :  { %p486_p1 = scmp.lt.u32.totalorder %s482_s28, %s665_s1 }
   0x6   :  { %p488_p2 = pnand %p486_p1, %p483_p0 }
   0x8   :  { %491 = shalt.err (!%p488_p2)
}
   0x9   :  { %s492_s10 = scalar_lea.vmem %s23_s25, 4096  ;;  %p497_p4 = scmp.lt.s32.totalorder %s23_s25, %s23_s25 }
   0xa   :  { %p493_p3 = scmp.ne.s32.totalorder %s23_s25, %s492_s10  ;;  %p498_p5 = scmp.lt.s32.totalorder %s492_s10, %s492_s10 }
   0xc   :  { %p499_p6 = por %p498_p5, %p497_p4 }
   0xe   :  { %p500_p7 = pnand %p499_p6, %p493_p3 }
  0x10   :  { %503 = shalt.err (!%p500_p7)
}
  0x11   :  { %s555_s11 = smov 256   ;;  %s556_s12 = smov 16  }
  0x12   :  { %28 = dma.hbm_to_vmem [thread:$0]  %s665_s1, 4096, %s23_s25, [#allocation3], %s555_s11, %s555_s11, %s556_s12  }
  0x13   :  { %s557_s15 = smov [#allocation5]   ;;  %s504_s19 = scalar_lea.hbm %s667_s3, 4096 }
  0x14   :  { %s36_s16 = sshll.u32 %s557_s15, 4  ;;  %p505_p8 = scmp.ne.s32.totalorder %s667_s3, %s504_s19  ;;  %s37_s16 = int_to_ptr.vmem [resolvable:$true] %s36_s16 }
  0x15   :  { %p508_p9 = scmp.lt.u32.totalorder %s504_s19, %s667_s3 }
  0x17   :  { %p510_p10 = pnand %p508_p9, %p505_p8 }
  0x19   :  { %513 = shalt.err (!%p510_p10)
}
  0x1a   :  { %s514_s24 = scalar_lea.vmem %s37_s16, 4096  ;;  %p519_p12 = scmp.lt.s32.totalorder %s37_s16, %s37_s16 }
  0x1b   :  { %p515_p11 = scmp.ne.s32.totalorder %s37_s16, %s514_s24  ;;  %p520_p13 = scmp.lt.s32.totalorder %s514_s24, %s514_s24 }
  0x1d   :  { %p521_p0 = por %p520_p13, %p519_p12 }
  0x1f   :  { %p522_p1 = pnand %p521_p0, %p515_p11 }
  0x21   :  { %525 = shalt.err (!%p522_p1)
}
  0x22   :  { %s558_s1 = smov 128   ;;  %s559_s25 = smov 8  }
  0x23   :  { %42 = dma.hbm_to_vmem [thread:$0]  %s667_s3, 4096, %s37_s16, [#allocation6], %s558_s1, %s558_s1, %s559_s25  }
  0x24   :  { %548 = dma.done.wait [#allocation3], 4096  }
  0x25   :  { %549 = vsyncadd [#allocation3], 4294963200 }
  0x26   :  { %550 = dma.done.wait [#allocation6], 4096  }
  0x27   :  { %551 = vsyncadd [#allocation6], 4294963200  ;;  %v560_v0 = vmov 0.0   ;;  %v58_v1 = vld [vmem:[#allocation2 + $0x8] sm:$0xff]  ;;  %v60_v2 = vld [vmem:[#allocation2 + $0x18] sm:$0xff]  ;;  %s561_s13 = smov [#allocation7]  }
  0x28   :  { %165 = vmatprep.mubr.f32.mxu0 %v560_v0  ;;  %v57_v3 = vld [vmem:[#allocation2] sm:$0xff]  ;;  %v406_v4 = vpack.c.bf16 %v60_v2, %v58_v1  ;;  %v59_v5 = vld [vmem:[#allocation2 + $0x10] sm:$0xff]  ;;  %v62_v6 = vld [vmem:[#allocation2 + $0x28] sm:$0xff]  ;;  %s352_s14 = sshll.u32 %s561_s13, 4  ;;  %s353_s14 = int_to_ptr.vmem [resolvable:$true] %s352_s14 }
  0x29   :  { %v64_v7 = vld [vmem:[#allocation2 + $0x38] sm:$0xff]  ;;  %v408_v8 = vpack.c.bf16 %v59_v5, %v57_v3  ;;  %v61_v10 = vld [vmem:[#allocation2 + $0x20] sm:$0xff]  ;;  %v63_v11 = vld [vmem:[#allocation2 + $0x30] sm:$0xff]  ;;  %s526_s15 = scalar_lea.vmem %s353_s14, 256  ;;  %p531_p3 = scmp.lt.s32.totalorder %s353_s14, %s353_s14 }
  0x2a   :  { %v410_v9 = vpack.c.bf16 %v64_v7, %v62_v6  ;;  %v66_v12 = vld [vmem:[#allocation2 + $0x48] sm:$0xff]  ;;  %407 = vmatprep.subr.bf16.mxu0 %v406_v4  ;;  %v68_v13 = vld [vmem:[#allocation2 + $0x58] sm:$0xff]  ;;  %v412_v14 = vpack.c.bf16 %v63_v11, %v61_v10  ;;  %v65_v16 = vld [vmem:[#allocation2 + $0x40] sm:$0xff]  ;;  %p527_p2 = scmp.ne.s32.totalorder %s353_s14, %s526_s15  ;;  %p532_p4 = scmp.lt.s32.totalorder %s526_s15, %s526_s15 }
  0x2b   :  { %409 = vmatpush1.bf16.msra.mxu0 %v408_v8  ;;  %v414_v15 = vpack.c.bf16 %v68_v13, %v66_v12  ;;  %v67_v17 = vld [vmem:[#allocation2 + $0x50] sm:$0xff]  ;;  %v70_v18 = vld [vmem:[#allocation2 + $0x68] sm:$0xff]  ;;  %v72_v19 = vld [vmem:[#allocation2 + $0x78] sm:$0xff] }
  0x2c   :  { %411 = vmatprep.subr.bf16.mxu0 %v410_v9  ;;  %v416_v20 = vpack.c.bf16 %v67_v17, %v65_v16  ;;  %v418_v21 = vpack.c.bf16 %v72_v19, %v70_v18  ;;  %v69_v22 = vld [vmem:[#allocation2 + $0x60] sm:$0xff]  ;;  %v71_v23 = vld [vmem:[#allocation2 + $0x70] sm:$0xff]  ;;  %v74_v24 = vld [vmem:[#allocation2 + $0x88] sm:$0xff]  ;;  %p533_p5 = por %p532_p4, %p531_p3 }
  0x2d   :  { %v76_v25 = vld [vmem:[#allocation2 + $0x98] sm:$0xff]  ;;  %v73_v26 = vld [vmem:[#allocation2 + $0x80] sm:$0xff]  ;;  %v75_v27 = vld [vmem:[#allocation2 + $0x90] sm:$0xff]  ;;  %v420_v30 = vpack.c.bf16 %v71_v23, %v69_v22 }
  0x2e   :  { %v198_v28 = vld [vmem:[#allocation5 + $0x80] sm:$0xff]  ;;  %v199_v29 = vld [vmem:[#allocation5 + $0x88] sm:$0xff]  ;;  %v200_v35 = vld [vmem:[#allocation5 + $0x90] sm:$0xff]  ;;  %v422_v36 = vpack.c.bf16 %v76_v25, %v74_v24  ;;  %v424_v46 = vpack.c.bf16 %v75_v27, %v73_v26  ;;  %p534_p6 = pnand %p533_p5, %p527_p2 }
  0x2f   :  { %413 = vmatpush1.bf16.msra.mxu0 %v412_v14  ;;  %v78_v31 = vld [vmem:[#allocation2 + $0xa8] sm:$0xff]  ;;  %v438_v32 = vpack.c.bf16 %v199_v29, %v198_v28  ;;  %v182_v33 = vld [vmem:[#allocation5] sm:$0xff]  ;;  %v201_v38 = vld [vmem:[#allocation5 + $0x98] sm:$0xff] }
  0x30   :  { %415 = vmatprep.subr.bf16.mxu0 %v414_v15  ;;  %v183_v34 = vld [vmem:[#allocation5 + $0x8] sm:$0xff]  ;;  %v184_v39 = vld [vmem:[#allocation5 + $0x10] sm:$0xff]  ;;  %v185_v40 = vld [vmem:[#allocation5 + $0x18] sm:$0xff]  ;;  %v442_v42 = vpack.c.bf16 %v201_v38, %v200_v35 }
  0x31   :  { %v440_v37 = vpack.c.bf16 %v183_v34, %v182_v33  ;;  %v80_v41 = vld [vmem:[#allocation2 + $0xb8] sm:$0xff]  ;;  %439 = vmatprep.subr.bf16.mxu1 %v438_v32  ;;  %v202_v43 = vld [vmem:[#allocation5 + $0xa0] sm:$0xff]  ;;  %v203_v44 = vld [vmem:[#allocation5 + $0xa8] sm:$0xff]  ;;  %v444_v45 = vpack.c.bf16 %v185_v40, %v184_v39 }
  0x32   :  { %v77_v47 = vld [vmem:[#allocation2 + $0xa0] sm:$0xff]  ;;  %v446_v48 = vpack.c.bf16 %v203_v44, %v202_v43  ;;  %v187_v50 = vld [vmem:[#allocation5 + $0x28] sm:$0xff]  ;;  %v426_v51 = vpack.c.bf16 %v80_v41, %v78_v31  ;;  %v79_v52 = vld [vmem:[#allocation2 + $0xb0] sm:$0xff] }
  0x33   :  { %417 = vmatpush1.bf16.msra.mxu0 %v416_v20  ;;  %441 = vmatpush3.bf16.msra.mxu1 %v440_v37  ;;  %v186_v49 = vld [vmem:[#allocation5 + $0x20] sm:$0xff]  ;;  %v204_v53 = vld [vmem:[#allocation5 + $0xb0] sm:$0xff]  ;;  %v205_v54 = vld [vmem:[#allocation5 + $0xb8] sm:$0xff]  ;;  %v428_v58 = vpack.c.bf16 %v79_v52, %v77_v47 }
  0x34   :  { %419 = vmatprep.subr.bf16.mxu0 %v418_v21  ;;  %443 = vmatprep.subr.bf16.mxu1 %v442_v42  ;;  %v82_v55 = vld [vmem:[#allocation2 + $0xc8] sm:$0xff]  ;;  %v84_v56 = vld [vmem:[#allocation2 + $0xd8] sm:$0xff]  ;;  %v448_v57 = vpack.c.bf16 %v187_v50, %v186_v49  ;;  %v81_v59 = vld [vmem:[#allocation2 + $0xc0] sm:$0xff]  ;;  %v450_v60 = vpack.c.bf16 %v205_v54, %v204_v53 }
  0x35   :  { %v188_v61 = vld [vmem:[#allocation5 + $0x30] sm:$0xff]  ;;  %v189_v62 = vld [vmem:[#allocation5 + $0x38] sm:$0xff]  ;;  %v430_v63 = vpack.c.bf16 %v84_v56, %v82_v55  ;;  %v206_v2 = vld [vmem:[#allocation5 + $0xc0] sm:$0xff] }
  0x36   :  { %v83_v1 = vld [vmem:[#allocation2 + $0xd0] sm:$0xff]  ;;  %v207_v3 = vld [vmem:[#allocation5 + $0xc8] sm:$0xff]  ;;  %v88_v5 = vld [vmem:[#allocation2 + $0xf8] sm:$0xff]  ;;  %v452_v6 = vpack.c.bf16 %v189_v62, %v188_v61 }
  0x37   :  { %421 = vmatpush1.bf16.msra.mxu0 %v420_v30  ;;  %445 = vmatpush3.bf16.msra.mxu1 %v444_v45  ;;  %v86_v4 = vld [vmem:[#allocation2 + $0xe8] sm:$0xff]  ;;  %v432_v7 = vpack.c.bf16 %v83_v1, %v81_v59  ;;  %v85_v8 = vld [vmem:[#allocation2 + $0xe0] sm:$0xff]  ;;  %v454_v9 = vpack.c.bf16 %v207_v3, %v206_v2  ;;  %v87_v13 = vld [vmem:[#allocation2 + $0xf0] sm:$0xff] }
  0x38   :  { %423 = vmatprep.subr.bf16.mxu0 %v422_v36  ;;  %447 = vmatprep.subr.bf16.mxu1 %v446_v48  ;;  %v190_v10 = vld [vmem:[#allocation5 + $0x40] sm:$0xff]  ;;  %v191_v11 = vld [vmem:[#allocation5 + $0x48] sm:$0xff]  ;;  %v434_v12 = vpack.c.bf16 %v88_v5, %v86_v4  ;;  %v208_v14 = vld [vmem:[#allocation5 + $0xd0] sm:$0xff]  ;;  %v436_v17 = vpack.c.bf16 %v87_v13, %v85_v8  ;;  %v91_v36 = vlaneseq }
  0x39   :  { %v209_v15 = vld [vmem:[#allocation5 + $0xd8] sm:$0xff]  ;;  %v456_v16 = vpack.c.bf16 %v191_v11, %v190_v10  ;;  %v192_v19 = vld [vmem:[#allocation5 + $0x50] sm:$0xff]  ;;  %v210_v21 = vld [vmem:[#allocation5 + $0xe0] sm:$0xff] }
  0x3a   :  { %v458_v18 = vpack.c.bf16 %v209_v15, %v208_v14  ;;  %v193_v20 = vld [vmem:[#allocation5 + $0x58] sm:$0xff]  ;;  %v211_v22 = vld [vmem:[#allocation5 + $0xe8] sm:$0xff]  ;;  %v55_v24 = vld [vmem:[%s664_s0] sm:$0xff] }
  0x3b   :  { %425 = vmatpush1.bf16.msra.mxu0 %v424_v46  ;;  %449 = vmatpush3.bf16.msra.mxu1 %v448_v57  ;;  %v460_v23 = vpack.c.bf16 %v193_v20, %v192_v19  ;;  %v462_v25 = vpack.c.bf16 %v211_v22, %v210_v21  ;;  %v56_v26 = vld [vmem:[%s664_s0 + $0x8] sm:$0xff]  ;;  %v194_v27 = vld [vmem:[#allocation5 + $0x60] sm:$0xff]  ;;  %v212_v30 = vld [vmem:[#allocation5 + $0xf0] sm:$0xff] }
  0x3c   :  { %427 = vmatprep.subr.bf16.mxu0 %v426_v51  ;;  %451 = vmatprep.subr.bf16.mxu1 %v450_v60  ;;  %v195_v28 = vld [vmem:[#allocation5 + $0x68] sm:$0xff]  ;;  %v213_v31 = vld [vmem:[#allocation5 + $0xf8] sm:$0xff]  ;;  %v196_v33 = vld [vmem:[#allocation5 + $0x70] sm:$0xff] }
  0x3d   :  { %v464_v29 = vpack.c.bf16 %v195_v28, %v194_v27  ;;  %v466_v32 = vpack.c.bf16 %v213_v31, %v212_v30  ;;  %v197_v34 = vld [vmem:[#allocation5 + $0x78] sm:$0xff]  ;;  %v89_v38 = vld [vmem:[%s666_s2] sm:$0x3] }
  0x3e   :  { %v468_v35 = vpack.c.bf16 %v197_v34, %v196_v33  ;;  %v365_v55 = vld [vmem:[%s668_s4] ss:$0 sm:$0xff] }
  0x3f   :  { %429 = vmatpush1.bf16.msra.mxu0 %v428_v58  ;;  %453 = vmatpush3.bf16.msra.mxu1 %v452_v6  ;;  %v366_v22 = vld [vmem:[%s669_s5] ss:$0 sm:$0xff] }
  0x40   :  { %431 = vmatprep.subr.bf16.mxu0 %v430_v63  ;;  %455 = vmatprep.subr.bf16.mxu1 %v454_v9 }
  0x43   :  { %433 = vmatpush1.bf16.msra.mxu0 %v432_v7  ;;  %457 = vmatpush3.bf16.msra.mxu1 %v456_v16 }
  0x44   :  { %435 = vmatprep.subr.bf16.mxu0 %v434_v12  ;;  %459 = vmatprep.subr.bf16.mxu1 %v458_v18 }
  0x47   :  { %437 = vmatpush1.bf16.msra.mxu0 %v436_v17  ;;  %461 = vmatpush3.bf16.msra.mxu1 %v460_v23 }
  0x48   :  { %463 = vmatprep.subr.bf16.mxu1 %v462_v25 }
  0x4a   :  { %166 = vmatmul.mubr.f32.vlgmr.msra.gmra.mrb[0].mxu0 %v55_v24 }
  0x4b   :  { %171 = vmatprep.mubr.f32.mxu0 %v560_v0  ;;  %465 = vmatpush3.bf16.msra.mxu1 %v464_v29  ;;  %v92_v0 = vshrl.u32 %v91_v36, 7 }
  0x4c   :  { %467 = vmatprep.subr.bf16.mxu1 %v466_v32 }
  0x4d   :  { %v93_v37 = vsub.s32 0, %v92_v0  ;;  %v97_v39 = vsub.s32 1, %v92_v0 }
  0x4e   :  { %172 = vmatmul.mubr.f32.gmra.mrb[2].mxu0 %v56_v26 }
  0x4f   :  { %469 = vmatpush3.bf16.msra.mxu1 %v468_v35  ;;  %v94_v40 = vrot.slane %v89_v38, %v93_v37  ;;  %v98_v41 = vrot.slane %v89_v38, %v97_v39 }
 0x11d   :  { %v167_v42 = vpop.f32.mrb[0].mxu0 }
 0x11e   :  { %v168_v43 = vadd.f32 %v167_v42, %v94_v40  ;;  %v169_v44 = vpop.f32.mrb[1].mxu0 }
 0x11f   :  { %v170_v45 = vadd.f32 %v169_v44, %v98_v41 }
 0x120   :  { %v178_v48 = vmax.f32 %v168_v43, 0.0 }
 0x121   :  { %v173_v46 = vpop.f32.mrb[2].mxu0  ;;  %v179_v47 = vmax.f32 %v170_v45, 0.0 }
 0x122   :  { %v174_v49 = vadd.f32 %v173_v46, %v94_v40  ;;  %v175_v50 = vpop.f32.mrb[3].mxu0 }
 0x123   :  { %v176_v51 = vadd.f32 %v175_v50, %v98_v41  ;;  %285 = vmatprep.mubr.f32.mxu1 %v179_v47 }
 0x124   :  { %286 = vmatmul.mubr.f32.vlgmr.msra.gmra.mrb[0].mxu1 %v178_v48  ;;  %v180_v53 = vmax.f32 %v174_v49, 0.0 }
 0x125   :  { %v181_v52 = vmax.f32 %v176_v51, 0.0 }
 0x127   :  { %290 = vmatprep.mubr.f32.mxu1 %v181_v52 }
 0x128   :  { %291 = vmatmul.mubr.f32.gmra.mrb[2].mxu1 %v180_v53 }
 0x1f7   :  { %v400_v54 = vpop.f32.mrb[0].mxu1 }
 0x1f8   :  { %v401_v56 = vpop.f32.mrb[1].mxu1 }
 0x1f9   :  { %v402_v57 = vadd.f32 %v401_v56, %v400_v54 }
 0x1fb   :  { %v288_v58 = vadd.f32 %v402_v57, %v365_v55  ;;  %v403_v59 = vpop.f32.mrb[2].mxu1 }
 0x1fc   :  { %v404_v60 = vpop.f32.mrb[3].mxu1 }
 0x1fd   :  { %v405_v61 = vadd.f32 %v404_v60, %v403_v59  ;;  %v296_v62 = vadd.f32 %v288_v58, %v55_v24  ;;  %v367_v24 = vld [vmem:[%s670_s6] ss:$0 sm:$0xff] }
 0x1ff   :  { %v293_v63 = vadd.f32 %v405_v61, %v365_v55  ;;  %300 = vadd.xlane.f32.xlu0 %v296_v62  ;;  %v307_v1 = vmul.f32 %v296_v62, %v296_v62 }
 0x201   :  { %309 = vadd.xlane.f32.xlu1 %v307_v1  ;;  %v297_v2 = vadd.f32 %v293_v63, %v56_v26 }
 0x203   :  { %302 = vadd.xlane.f32.xlu0 %v297_v2  ;;  %v308_v3 = vmul.f32 %v297_v2, %v297_v2 }
 0x205   :  { %311 = vadd.xlane.f32.xlu1 %v308_v3 }
 0x28c   :  { %v301_v4 = vpop.xlane.xlu0 %300 }
 0x28d   :  { %v305_v5 = vmul.f32 0.0078125, %v301_v4 }
 0x28e   :  { %v310_v6 = vpop.xlane.xlu1 %309 }
 0x28f   :  { %v315_v7 = vmul.f32 %v305_v5, %v305_v5  ;;  %v313_v8 = vmul.f32 0.0078125, %v310_v6  ;;  %v321_v20 = vsub.f32 %v296_v62, %v305_v5 }
 0x290   :  { %v303_v9 = vpop.xlane.xlu0 %302 }
 0x291   :  { %v317_v10 = vsub.f32 %v313_v8, %v315_v7  ;;  %v306_v11 = vmul.f32 0.0078125, %v303_v9 }
 0x292   :  { %v312_v12 = vpop.xlane.xlu1 %311 }
 0x293   :  { %v319_v13 = vmax.f32 %v317_v10, 0.0  ;;  %v316_v14 = vmul.f32 %v306_v11, %v306_v11  ;;  %v314_v15 = vmul.f32 0.0078125, %v312_v12  ;;  %v322_v25 = vsub.f32 %v297_v2, %v306_v11 }
 0x295   :  { %v323_v16 = vadd.f32 1e-05, %v319_v13  ;;  %v318_v17 = vsub.f32 %v314_v15, %v316_v14 }
 0x297   :  { %478 = vrsqrt.f32 %v323_v16  ;;  %v320_v18 = vmax.f32 %v318_v17, 0.0 }
 0x299   :  { %v324_v19 = vadd.f32 1e-05, %v320_v18 }
 0x29b   :  { %480 = vrsqrt.f32 %v324_v19 }
 0x2a1   :  { %v479_v21 = vpop.eup %478 }
 0x2a2   :  { %v327_v23 = vmul.f32 %v479_v21, %v321_v20 }
 0x2a4   :  { %v335_v26 = vmul.f32 %v366_v22, %v327_v23 }
 0x2a5   :  { %v481_v27 = vpop.eup %480 }
 0x2a6   :  { %v328_v28 = vmul.f32 %v481_v27, %v322_v25  ;;  %v343_v29 = vadd.f32 %v367_v24, %v335_v26 }
 0x2a8   :  { %v336_v30 = vmul.f32 %v366_v22, %v328_v28  ;;  %345 = vst [vmem:[#allocation7] sm:$0xff] %v343_v29 }
 0x2aa   :  { %v344_v31 = vadd.f32 %v367_v24, %v336_v30 }
 0x2ac   :  { %346 = vst [vmem:[#allocation7 + $0x8] sm:$0xff] %v344_v31 }
 0x2ad   :  { %537 = shalt.err (!%p534_p6)
}
 0x2ae   :  { %s538_s16 = scalar_lea.hbm %s671_s7, 256 }
 0x2af   :  { %p539_p7 = scmp.ne.s32.totalorder %s671_s7, %s538_s16  ;;  %p542_p8 = scmp.lt.u32.totalorder %s538_s16, %s671_s7 }
 0x2b1   :  { %p544_p9 = pnand %p542_p8, %p539_p7 }
 0x2b3   :  { %547 = shalt.err (!%p544_p9)
}
 0x2b4   :  { %358 = dma.vmem_to_hbm [thread:$0]  %s353_s14, 256, %s671_s7, [#allocation4], %s558_s1, %s558_s1, %s559_s25  }
 0x2b5   :  { %552 = dma.done.wait [#allocation4], 256  }
 0x2b6   :  { %553 = vsyncadd [#allocation4], 4294967040 }
 0x2b7   :  { %362 = vsyncpa [#allocation3], 1 }
 0x2b8   :  { %363 = vsyncpa [#allocation6], 1 }
 0x2b9   :  { %364 = vsyncpa [#allocation4], 1 }

</bundles_post_ra>
